<compile_context>
chip_gen: v7x
topology: tpu7x:2x2x1
jax: 0.10.0
libtpu: 0.0.40
codegen_flags: <defaults>
</compile_context>

<pallas_src>
import functools
import math

import jax
import jax.numpy as jnp
from jax.experimental import pallas as pl
from jax.experimental.pallas import tpu as pltpu


# ----------------------------------------------------------------------------
# Kernel
# ----------------------------------------------------------------------------
def _commnet_kernel(x_ref, w_ref, b_ref, out_ref, *, comm_steps, n_agents,
                    dims, woff, boff):
    """x_ref: (Rt, F) rows are batch-major (batch, agent).
    w_ref: packed weight slab (compute dtype).  b_ref: packed bias slab (f32)."""
    F, H, Mp, G = dims
    cdt = w_ref.dtype                       # matmul input dtype (f32 or bf16)

    def W(name, r, c):                      # static slice of the weight slab
        o = woff[name]
        return w_ref[o:o + r, :c]

    def Bb(name, c):                        # static slice of the f32 bias slab
        o = boff[name]
        return b_ref[o:o + 1, :c]

    def mm(a, b):                           # MXU matmul, f32 accumulation
        return jnp.dot(a.astype(cdt), b, preferred_element_type=jnp.float32)

    rt = x_ref.shape[0]
    tb = rt // n_agents                     # batches per tile (static)

    x = x_ref[...]                          # (Rt, F)

    # ---- _in_mlp + out_mlp-skip, fused shared-LHS matmul: [w1 | wo1x] -------
    xw = mm(x, W("wx", F, 2 * H))                         # (Rt, 2H)
    h = jnp.tanh(xw[:, :H] + Bb("b1", H))
    xo = xw[:, H:2 * H]                                   # kept for out_mlp
    h = jnp.tanh(mm(h, W("w2", H, H)) + Bb("b2", H))
    hidden = mm(h, W("w3", H, Mp)) + Bb("b3", Mp)         # (Rt, Mp) f32 padded
    cell = jnp.zeros_like(hidden)                         # cols M..Mp stay 0

    # ---- loop-invariant weights hoisted out of the unrolled comm loop -------
    whid = W("whid", Mp, G + H)             # [whh(4 gates) | wc1] fused RHS
    wcm = W("wcm", H, G)                    # wc2 @ wih folded (kills K=8 mm)
    bc1 = Bb("bc1", H)
    bgn = Bb("bgn", G)                      # bg + bc2 @ wih

    # Guard N==1 (torch would divide by zero); CommNet assumes N >= 2.
    inv_nm1 = 1.0 / float(max(n_agents - 1, 1))

    for _ in range(comm_steps):
        hw = mm(hidden, whid)                              # (Rt, G+H)
        c1 = jnp.tanh(hw[:, G:G + H] + bc1)                # (Rt, H)
        z = mm(c1, wcm)                                    # (Rt, G)

        # Per-batch "mean of the other agents" (rows are batch-major):
        # reshape only splits the leading dim, then sublane-reduce.
        z3 = z.reshape(tb, n_agents, G)
        total = jnp.sum(z3, axis=1, keepdims=True)         # (tb, 1, G)
        agg = ((total - z3) * inv_nm1).reshape(rt, G)

        # Fused LSTMCell pre-activation, gate order [i, f, o, g].
        pre = agg + hw[:, :G] + bgn                        # (Rt, G)
        # NOTE(review): gate slices below sit at lane offsets 32/64/96; if the
        # bundle dump shows Mosaic relayouts here, align with pltpu.roll (XLU).
        sig = jax.nn.sigmoid(pre[:, :3 * Mp])              # one sigmoid, 3 gates
        g_i = sig[:, :Mp]
        g_f = sig[:, Mp:2 * Mp]
        g_o = sig[:, 2 * Mp:3 * Mp]
        g_g = jnp.tanh(pre[:, 3 * Mp:])                    # one tanh, last gate
        cell = g_f * cell + g_i * g_g
        hidden = g_o * jnp.tanh(cell)

    # ---- _out_mlp on concat([x, hidden], -1) (split-weight form) ------------
    o = jnp.tanh(xo + mm(hidden, W("wo1h", Mp, H)) + Bb("bo1", H))
    o = jnp.tanh(mm(o, W("wo2", H, H)) + Bb("bo2", H))

    # Final Linear(H, 1) emitted lane-dense as (1, Rt): out = tanh(wo3^T @ o^T + b)
    pre_out = jax.lax.dot_general(
        W("wo3t", 1, H), o.astype(cdt),
        dimension_numbers=(((1,), (1,)), ((), ())),
        preferred_element_type=jnp.float32)                # (1, Rt)
    out_ref[...] = jnp.tanh(pre_out + Bb("bo3", 1))


# ----------------------------------------------------------------------------
# Parameter packing (pad, fuse, fold) -> weight slab (compute dtype) + f32 bias slab
# ----------------------------------------------------------------------------
def _round_up(v, m):
    return ((v + m - 1) // m) * m


def _pack_params(params, F, H, M, C, compute_dtype):
    Mp = _round_up(M, 32)          # gate blocks land on 32-lane boundaries
    G = 4 * Mp                     # fused gate width (128 for M <= 32)
    f32 = jnp.float32

    def pad2(a, r, c):
        a = jnp.asarray(a, f32)
        return jnp.zeros((r, c), f32).at[:a.shape[0], :a.shape[1]].set(a)

    # Fused LSTM gate weights; bias = b_ih + b_hh already folded in params.
    gate_order = ("i", "f", "o", "g")
    wih = jnp.zeros((C, G), f32)
    whh = jnp.zeros((Mp, G), f32)
    bg = jnp.zeros((1, G), f32)
    for k, g in enumerate(gate_order):
        wih = wih.at[:, k * Mp:k * Mp + M].set(jnp.asarray(params[f"wih_{g}"], f32))
        whh = whh.at[:M, k * Mp:k * Mp + M].set(jnp.asarray(params[f"whh_{g}"], f32))
        bg = bg.at[:, k * Mp:k * Mp + M].set(jnp.asarray(params[f"b_{g}"], f32))

    # Algebraic fold: comm projection pushed through the linear aggregation.
    wcm = jnp.asarray(params["wc2"], f32) @ wih            # (H, G)
    bgn = bg + jnp.asarray(params["bc2"], f32) @ wih       # (1, G)

    # Shared-LHS fusions.
    whid = jnp.concatenate([whh, pad2(params["wc1"], Mp, H)], axis=1)  # (Mp, G+H)
    wx = jnp.concatenate([jnp.asarray(params["w1"], f32),
                          jnp.asarray(params["wo1x"], f32)], axis=1)   # (F, 2H)

    weights = [
        ("wx", wx),
        ("w2", params["w2"]),
        ("w3", pad2(params["w3"], H, Mp)),
        ("whid", whid),
        ("wcm", wcm),
        ("wo1h", pad2(params["wo1h"], Mp, H)),
        ("wo2", params["wo2"]),
        ("wo3t", jnp.asarray(params["wo3"], f32).T),
    ]
    biases = [
        ("b1", params["b1"]), ("b2", params["b2"]), ("b3", params["b3"]),
        ("bc1", params["bc1"]), ("bgn", bgn),
        ("bo1", params["bo1"]), ("bo2", params["bo2"]), ("bo3", params["bo3"]),
    ]

    def pack(items, dtype):
        lanes = _round_up(max(jnp.asarray(m, f32).shape[1] for _, m in items), 128)
        blocks, offsets, cur = [], {}, 0
        for name, m in items:
            m = jnp.asarray(m, f32)
            r = _round_up(m.shape[0], 8)       # keep every offset 8-aligned
            blocks.append(pad2(m, r, lanes))
            offsets[name] = cur
            cur += r
        return jnp.concatenate(blocks, axis=0).astype(dtype), offsets

    w_slab, woff = pack(weights, compute_dtype)   # matmul inputs (bf16 ok)
    b_slab, boff = pack(biases, f32)              # biases stay f32 always
    return w_slab, woff, b_slab, boff, (F, H, Mp, G)


# ----------------------------------------------------------------------------
# Tiling plan: whole batches per tile, lane-dense multi-tile grids, >= 2 steps
# ----------------------------------------------------------------------------
def _plan_tiles(B, N, max_rows=2048):
    """Returns (B_pad, TB, grid). Multi-tile grids use Rt = TB*N % 128 == 0 and
    >= 2 grid steps (v7x megacore); small problems stay a single exact tile."""
    R = B * N
    if R <= 256:
        return B, B, 1
    g = 128 // math.gcd(N, 128)        # smallest TB giving lane-dense tiles
    if g * N > max_rows:
        # Can't make lane-dense tiles within budget -> one exact tile (still
        # correct; may need more VMEM for pathological N).
        return B, B, 1
    tb = g
    while 2 * tb * N <= max_rows:
        tb *= 2
    B_pad = _round_up(B, tb)
    # Prefer >= 2 grid steps so v7x's second TensorCore gets work.
    while tb > g and B_pad // tb < 2:
        tb //= 2
        B_pad = _round_up(B, tb)
    grid = B_pad // tb
    if grid < 2:
        return B, B, 1
    return B_pad, tb, grid


# ----------------------------------------------------------------------------
# Wrapper
# ----------------------------------------------------------------------------
def commnet_forward(x, params, comm_steps=2, compute_dtype=jnp.bfloat16,
                    batch_tile=None, max_rows=2048):
    """Pallas-backed CommNet forward.  x: (B, N, F) or (N, F) -> (B, N, 1).

    compute_dtype controls the MXU input dtype only (weights + activations fed
    to matmuls); biases and all elementwise math stay f32, accumulation is f32.
    bf16 (default) is the native MXU path on v5e/v6e/v7x; pass jnp.float32 for
    bit-tight agreement with an f32 reference."""
    if x.ndim == 2:
        x = x[None]
    B, N, F = x.shape
    R = B * N
    H = params["w1"].shape[1]
    M = params["w3"].shape[1]
    C = params["wc2"].shape[1]

    w_slab, woff, b_slab, boff, dims = _pack_params(params, F, H, M, C,
                                                    compute_dtype)
    Mp, G = dims[2], dims[3]

    if batch_tile is None:
        B_pad, TB, grid_n = _plan_tiles(B, N, max_rows)
    else:
        TB = batch_tile
        B_pad = _round_up(B, TB)
        grid_n = B_pad // TB
        if grid_n > 1:
            assert (TB * N) % 128 == 0, "multi-tile grids need lane-dense tiles"
    Rt = TB * N
    R_pad = B_pad * N

    x2d = x.reshape(R, F).astype(compute_dtype)
    if R_pad != R:          # pad with zero (fake) batches; outputs dropped below
        x2d = jnp.concatenate(
            [x2d, jnp.zeros((R_pad - R, F), x2d.dtype)], axis=0)

    kernel = functools.partial(_commnet_kernel, comm_steps=comm_steps,
                               n_agents=N, dims=dims, woff=woff, boff=boff)

    # VMEM budget from the actual tile footprint + headroom, capped for v7x's
    # 64 MiB/TC (v5e/v6e have more; the cap only matters if tiles grow).
    itemsize = jnp.dtype(compute_dtype).itemsize
    x_tile_b = 2 * Rt * _round_up(F, 128) * itemsize          # double-buffered
    slab_b = 2 * (w_slab.size * w_slab.dtype.itemsize + b_slab.size * 4)
    act_b = 16 * Rt * 256 * 4                                  # live f32 activations
    out_b = 2 * 8 * _round_up(Rt, 128) * 4
    vmem_limit = int(min(max(x_tile_b + slab_b + act_b + out_b + (4 << 20),
                             32 << 20), 64 << 20))

    flops_row = (2 * F * 2 * H + 2 * H * H + 2 * H * Mp
                 + comm_steps * (2 * Mp * (G + H) + 2 * H * G)
                 + 2 * Mp * H + 2 * H * H + 2 * H)
    trans_row = 2 * H + comm_steps * (H + 3 * Mp + Mp + Mp) + 2 * H + 1
    bytes_accessed = (x2d.size * x2d.dtype.itemsize
                      + w_slab.size * w_slab.dtype.itemsize
                      + b_slab.size * 4 + R_pad * 4)

    # TODO(synk): pl.Buffered(1) on the constant-index slab specs would drop the
    # redundant second pipeline buffer (~0.2 MiB); left off pending verification.
    out = pl.pallas_call(
        kernel,
        out_shape=jax.ShapeDtypeStruct((1, R_pad), jnp.float32),
        grid_spec=pltpu.PrefetchScalarGridSpec(
            num_scalar_prefetch=0,
            grid=(grid_n,),
            in_specs=[
                pl.BlockSpec((Rt, F), lambda i: (i, 0)),          # x batch tile
                pl.BlockSpec(w_slab.shape, lambda i: (0, 0)),     # weight slab
                pl.BlockSpec(b_slab.shape, lambda i: (0, 0)),     # f32 bias slab
            ],
            out_specs=pl.BlockSpec((1, Rt), lambda i: (0, i)),    # lane-dense out
        ),
        compiler_params=pltpu.CompilerParams(
            dimension_semantics=("parallel",),
            vmem_limit_bytes=vmem_limit,
        ),
        cost_estimate=pl.CostEstimate(
            flops=int(R_pad * flops_row),
            transcendentals=int(R_pad * trans_row),
            bytes_accessed=int(bytes_accessed)),
    )(x2d, w_slab, b_slab)

    return out.reshape(R_pad)[:R].reshape(B, N, 1)


# ----------------------------------------------------------------------------
# Deterministic synthetic parameters (shapes match the torch module)
# ----------------------------------------------------------------------------
def init_params(key, input_size, hidden_size=32, memory_size=10, comm_size=4):
    keys = jax.random.split(key, 16)

    def lin(k, fan_in, fan_out):
        bound = 1.0 / float(fan_in) ** 0.5
        kw, kb = jax.random.split(k)
        w = jax.random.uniform(kw, (fan_in, fan_out), jnp.float32, -bound, bound)
        b = jax.random.uniform(kb, (1, fan_out), jnp.float32, -bound, bound)
        return w, b

    p = {}
    p["w1"], p["b1"] = lin(keys[0], input_size, hidden_size)
    p["w2"], p["b2"] = lin(keys[1], hidden_size, hidden_size)
    p["w3"], p["b3"] = lin(keys[2], hidden_size, memory_size)
    p["wc1"], p["bc1"] = lin(keys[3], memory_size, hidden_size)
    p["wc2"], p["bc2"] = lin(keys[4], hidden_size, comm_size)
    for idx, g in enumerate(("i", "f", "g", "o")):
        wih, bih = lin(keys[5 + idx], comm_size, memory_size)
        whh, bhh = lin(keys[9 + idx], memory_size, memory_size)
        p[f"wih_{g}"] = wih
        p[f"whh_{g}"] = whh
        p[f"b_{g}"] = bih + bhh                 # LSTMCell bias = b_ih + b_hh
    wo1, bo1 = lin(keys[13], input_size + memory_size, hidden_size)
    p["wo1x"], p["wo1h"], p["bo1"] = wo1[:input_size], wo1[input_size:], bo1
    p["wo2"], p["bo2"] = lin(keys[14], hidden_size, hidden_size)
    p["wo3"], p["bo3"] = lin(keys[15], hidden_size, 1)
    return p


# ----------------------------------------------------------------------------
# Pure-JAX reference mirroring the torch forward exactly
# ----------------------------------------------------------------------------
def commnet_ref(x, params, comm_steps=2):
    if x.ndim == 2:
        x = x[None]
    B, N, F = x.shape
    x2 = x.reshape(B * N, F).astype(jnp.float32)
    h = jnp.tanh(x2 @ params["w1"] + params["b1"])
    h = jnp.tanh(h @ params["w2"] + params["b2"])
    hidden = h @ params["w3"] + params["b3"]
    cell = jnp.zeros_like(hidden)
    for _ in range(comm_steps):
        c = jnp.tanh(hidden @ params["wc1"] + params["bc1"])
        comm = (c @ params["wc2"] + params["bc2"]).reshape(B, N, -1)
        total = comm.sum(axis=1, keepdims=True)
        comm = ((total - comm) / (N - 1)).reshape(B * N, -1)
        gi = jax.nn.sigmoid(comm @ params["wih_i"] + hidden @ params["whh_i"] + params["b_i"])
        gf = jax.nn.sigmoid(comm @ params["wih_f"] + hidden @ params["whh_f"] + params["b_f"])
        gg = jnp.tanh(comm @ params["wih_g"] + hidden @ params["whh_g"] + params["b_g"])
        go = jax.nn.sigmoid(comm @ params["wih_o"] + hidden @ params["whh_o"] + params["b_o"])
        cell = gf * cell + gi * gg
        hidden = go * jnp.tanh(cell)
    o = jnp.tanh(x2 @ params["wo1x"] + hidden @ params["wo1h"] + params["bo1"])
    o = jnp.tanh(o @ params["wo2"] + params["bo2"])
    out = jnp.tanh(o @ params["wo3"] + params["bo3"])
    return out.reshape(B, N, 1)


if __name__ == "__main__":
    key = jax.random.PRNGKey(0)
    k_x, k_p = jax.random.split(key)

    B, N, F = 2, 8, 16          # batch, agents, per-agent input features
    x = jax.random.normal(k_x, (B, N, F), jnp.float32)
    params = init_params(k_p, input_size=F, hidden_size=32, memory_size=10,
                         comm_size=4)
    ref = commnet_ref(x, params, comm_steps=2)

    # f32 matmul-input path: strict check (validates the wc2@wih fold exactly).
    out_f32 = jax.block_until_ready(
        commnet_forward(x, params, comm_steps=2, compute_dtype=jnp.float32))
    assert out_f32.shape == (B, N, 1), out_f32.shape
    assert jnp.allclose(out_f32, ref, rtol=1e-4, atol=1e-4), "f32 mismatch vs reference"

    # Default bf16 MXU-input path (f32 biases / f32 accumulation): looser check.
    out_bf16 = jax.block_until_ready(commnet_forward(x, params, comm_steps=2))
    assert jnp.allclose(out_bf16, ref, rtol=5e-2, atol=5e-2), "bf16 mismatch vs reference"

    # Multi-tile path: batch padding + lane-dense 2-step grid (megacore shape).
    B2, N2 = 40, 8
    x2 = jax.random.normal(jax.random.PRNGKey(1), (B2, N2, F), jnp.float32)
    out2 = jax.block_until_ready(
        commnet_forward(x2, params, comm_steps=2, compute_dtype=jnp.float32,
                        max_rows=512))
    ref2 = commnet_ref(x2, params, comm_steps=2)
    assert out2.shape == (B2, N2, 1), out2.shape
    assert jnp.allclose(out2, ref2, rtol=1e-4, atol=1e-4), "tiled mismatch vs reference"

    print("KERNEL_OK")
</pallas_src>

<mosaic_0001>
module attributes {stable_mosaic.version = 11 : i64} {
  func.func @_commnet_kernel(%arg0: i32, %arg1: memref<16x16xf32, #tpu.memory_space<vmem>>, %arg2: memref<216x256xf32, #tpu.memory_space<vmem>>, %arg3: memref<64x128xf32, #tpu.memory_space<vmem>>, %arg4: memref<1x16xf32, #tpu.memory_space<vmem>>) attributes {dimension_semantics = [#tpu.dimension_semantics<parallel>], iteration_bounds = array<i64: 1>, scalar_prefetch = 0 : i64, scratch_operands = 0 : i64, tpu.core_type = #tpu.core_type<tc>, window_params = [{transform_indices = @transform_0, window_bounds = array<i64: 16, 16>}, {pipeline_mode = #tpu.pipeline_mode<synchronous>, transform_indices = @transform_1, window_bounds = array<i64: 216, 256>}, {pipeline_mode = #tpu.pipeline_mode<synchronous>, transform_indices = @transform_2, window_bounds = array<i64: 64, 128>}, {transform_indices = @transform_3, window_bounds = array<i64: 1, 16>}]} {
    %c0 = arith.constant 0 : index
    %c0_0 = arith.constant 0 : index
    %0 = vector.load %arg1[%c0, %c0_0] : memref<16x16xf32, #tpu.memory_space<vmem>>, vector<16x16xf32>
    %c0_1 = arith.constant 0 : index
    %c0_2 = arith.constant 0 : index
    %1 = vector.load %arg2[%c0_1, %c0_2] : memref<216x256xf32, #tpu.memory_space<vmem>>, vector<16x64xf32>
    %cst = arith.constant dense<0.000000e+00> : vector<16x64xf32>
    %2 = tpu.matmul %0, %1, %cst {dimension_numbers = #tpu.dot_dimension_numbers<[1], [0], [0], [1], [0, 0, 1, 1], [], []>} : vector<16x16xf32>, vector<16x64xf32>, vector<16x64xf32> -> vector<16x64xf32>
    %3 = vector.extract_strided_slice %2 {offsets = [0, 0], sizes = [16, 32], strides = [1, 1]} : vector<16x64xf32> to vector<16x32xf32>
    %c0_3 = arith.constant 0 : index
    %c0_4 = arith.constant 0 : index
    %4 = vector.load %arg3[%c0_3, %c0_4] : memref<64x128xf32, #tpu.memory_space<vmem>>, vector<1x32xf32>
    %5 = vector.broadcast %4 : vector<1x32xf32> to vector<16x32xf32>
    %6 = arith.addf %3, %5 : vector<16x32xf32>
    %7 = math.tanh %6 : vector<16x32xf32>
    %8 = vector.extract_strided_slice %2 {offsets = [0, 32], sizes = [16, 32], strides = [1, 1]} : vector<16x64xf32> to vector<16x32xf32>
    %c16 = arith.constant 16 : index
    %c0_5 = arith.constant 0 : index
    %9 = vector.load %arg2[%c16, %c0_5] : memref<216x256xf32, #tpu.memory_space<vmem>>, vector<32x32xf32>
    %cst_6 = arith.constant dense<0.000000e+00> : vector<16x32xf32>
    %10 = tpu.matmul %7, %9, %cst_6 {dimension_numbers = #tpu.dot_dimension_numbers<[1], [0], [0], [1], [0, 0, 1, 1], [], []>} : vector<16x32xf32>, vector<32x32xf32>, vector<16x32xf32> -> vector<16x32xf32>
    %c8 = arith.constant 8 : index
    %c0_7 = arith.constant 0 : index
    %11 = vector.load %arg3[%c8, %c0_7] : memref<64x128xf32, #tpu.memory_space<vmem>>, vector<1x32xf32>
    %12 = vector.broadcast %11 : vector<1x32xf32> to vector<16x32xf32>
    %13 = arith.addf %10, %12 : vector<16x32xf32>
    %14 = math.tanh %13 : vector<16x32xf32>
    %c48 = arith.constant 48 : index
    %c0_8 = arith.constant 0 : index
    %15 = vector.load %arg2[%c48, %c0_8] : memref<216x256xf32, #tpu.memory_space<vmem>>, vector<32x32xf32>
    %cst_9 = arith.constant dense<0.000000e+00> : vector<16x32xf32>
    %16 = tpu.matmul %14, %15, %cst_9 {dimension_numbers = #tpu.dot_dimension_numbers<[1], [0], [0], [1], [0, 0, 1, 1], [], []>} : vector<16x32xf32>, vector<32x32xf32>, vector<16x32xf32> -> vector<16x32xf32>
    %c16_10 = arith.constant 16 : index
    %c0_11 = arith.constant 0 : index
    %17 = vector.load %arg3[%c16_10, %c0_11] : memref<64x128xf32, #tpu.memory_space<vmem>>, vector<1x32xf32>
    %18 = vector.broadcast %17 : vector<1x32xf32> to vector<16x32xf32>
    %19 = arith.addf %16, %18 : vector<16x32xf32>
    %cst_12 = arith.constant 0.000000e+00 : f32
    %20 = vector.broadcast %cst_12 : f32 to vector<16x32xf32>
    %c80 = arith.constant 80 : index
    %c0_13 = arith.constant 0 : index
    %21 = vector.load %arg2[%c80, %c0_13] : memref<216x256xf32, #tpu.memory_space<vmem>>, vector<32x160xf32>
    %c112 = arith.constant 112 : index
    %c0_14 = arith.constant 0 : index
    %22 = vector.load %arg2[%c112, %c0_14] : memref<216x256xf32, #tpu.memory_space<vmem>>, vector<32x128xf32>
    %c24 = arith.constant 24 : index
    %c0_15 = arith.constant 0 : index
    %23 = vector.load %arg3[%c24, %c0_15] : memref<64x128xf32, #tpu.memory_space<vmem>>, vector<1x32xf32>
    %c32 = arith.constant 32 : index
    %c0_16 = arith.constant 0 : index
    %24 = vector.load %arg3[%c32, %c0_16] : memref<64x128xf32, #tpu.memory_space<vmem>>, vector<1x128xf32>
    %cst_17 = arith.constant dense<0.000000e+00> : vector<16x160xf32>
    %25 = tpu.matmul %19, %21, %cst_17 {dimension_numbers = #tpu.dot_dimension_numbers<[1], [0], [0], [1], [0, 0, 1, 1], [], []>} : vector<16x32xf32>, vector<32x160xf32>, vector<16x160xf32> -> vector<16x160xf32>
    %26 = vector.extract_strided_slice %25 {offsets = [0, 128], sizes = [16, 32], strides = [1, 1]} : vector<16x160xf32> to vector<16x32xf32>
    %27 = vector.broadcast %23 : vector<1x32xf32> to vector<16x32xf32>
    %28 = arith.addf %26, %27 : vector<16x32xf32>
    %29 = math.tanh %28 : vector<16x32xf32>
    %cst_18 = arith.constant dense<0.000000e+00> : vector<16x128xf32>
    %30 = tpu.matmul %29, %22, %cst_18 {dimension_numbers = #tpu.dot_dimension_numbers<[1], [0], [0], [1], [0, 0, 1, 1], [], []>} : vector<16x32xf32>, vector<32x128xf32>, vector<16x128xf32> -> vector<16x128xf32>
    %31 = vector.shape_cast %30 : vector<16x128xf32> to vector<2x8x128xf32>
    %cst_19 = arith.constant dense<0.000000e+00> : vector<2x128xf32>
    %32 = vector.multi_reduction <add>, %31, %cst_19 [1] : vector<2x8x128xf32> to vector<2x128xf32>
    %33 = vector.shape_cast %32 : vector<2x128xf32> to vector<2x1x128xf32>
    %34 = vector.broadcast %33 : vector<2x1x128xf32> to vector<2x8x128xf32>
    %35 = arith.subf %34, %31 : vector<2x8x128xf32>
    %cst_20 = arith.constant 0.142857149 : f32
    %36 = vector.broadcast %cst_20 : f32 to vector<2x8x128xf32>
    %37 = arith.mulf %35, %36 : vector<2x8x128xf32>
    %38 = vector.shape_cast %37 : vector<2x8x128xf32> to vector<16x128xf32>
    %39 = vector.extract_strided_slice %25 {offsets = [0, 0], sizes = [16, 128], strides = [1, 1]} : vector<16x160xf32> to vector<16x128xf32>
    %40 = arith.addf %38, %39 : vector<16x128xf32>
    %41 = vector.broadcast %24 : vector<1x128xf32> to vector<16x128xf32>
    %42 = arith.addf %40, %41 : vector<16x128xf32>
    %43 = vector.extract_strided_slice %42 {offsets = [0, 0], sizes = [16, 96], strides = [1, 1]} : vector<16x128xf32> to vector<16x96xf32>
    %44 = arith.negf %43 : vector<16x96xf32>
    %45 = math.exp %44 : vector<16x96xf32>
    %cst_21 = arith.constant 1.000000e+00 : f32
    %46 = vector.broadcast %cst_21 : f32 to vector<16x96xf32>
    %47 = arith.addf %46, %45 : vector<16x96xf32>
    %48 = arith.divf %46, %47 : vector<16x96xf32>
    %49 = vector.extract_strided_slice %48 {offsets = [0, 0], sizes = [16, 32], strides = [1, 1]} : vector<16x96xf32> to vector<16x32xf32>
    %50 = vector.extract_strided_slice %48 {offsets = [0, 32], sizes = [16, 32], strides = [1, 1]} : vector<16x96xf32> to vector<16x32xf32>
    %51 = vector.extract_strided_slice %48 {offsets = [0, 64], sizes = [16, 32], strides = [1, 1]} : vector<16x96xf32> to vector<16x32xf32>
    %52 = vector.extract_strided_slice %42 {offsets = [0, 96], sizes = [16, 32], strides = [1, 1]} : vector<16x128xf32> to vector<16x32xf32>
    %53 = math.tanh %52 : vector<16x32xf32>
    %54 = arith.mulf %50, %20 : vector<16x32xf32>
    %55 = arith.mulf %49, %53 : vector<16x32xf32>
    %56 = arith.addf %54, %55 : vector<16x32xf32>
    %57 = math.tanh %56 : vector<16x32xf32>
    %58 = arith.mulf %51, %57 : vector<16x32xf32>
    %cst_22 = arith.constant dense<0.000000e+00> : vector<16x160xf32>
    %59 = tpu.matmul %58, %21, %cst_22 {dimension_numbers = #tpu.dot_dimension_numbers<[1], [0], [0], [1], [0, 0, 1, 1], [], []>} : vector<16x32xf32>, vector<32x160xf32>, vector<16x160xf32> -> vector<16x160xf32>
    %60 = vector.extract_strided_slice %59 {offsets = [0, 128], sizes = [16, 32], strides = [1, 1]} : vector<16x160xf32> to vector<16x32xf32>
    %61 = vector.broadcast %23 : vector<1x32xf32> to vector<16x32xf32>
    %62 = arith.addf %60, %61 : vector<16x32xf32>
    %63 = math.tanh %62 : vector<16x32xf32>
    %cst_23 = arith.constant dense<0.000000e+00> : vector<16x128xf32>
    %64 = tpu.matmul %63, %22, %cst_23 {dimension_numbers = #tpu.dot_dimension_numbers<[1], [0], [0], [1], [0, 0, 1, 1], [], []>} : vector<16x32xf32>, vector<32x128xf32>, vector<16x128xf32> -> vector<16x128xf32>
    %65 = vector.shape_cast %64 : vector<16x128xf32> to vector<2x8x128xf32>
    %cst_24 = arith.constant dense<0.000000e+00> : vector<2x128xf32>
    %66 = vector.multi_reduction <add>, %65, %cst_24 [1] : vector<2x8x128xf32> to vector<2x128xf32>
    %67 = vector.shape_cast %66 : vector<2x128xf32> to vector<2x1x128xf32>
    %68 = vector.broadcast %67 : vector<2x1x128xf32> to vector<2x8x128xf32>
    %69 = arith.subf %68, %65 : vector<2x8x128xf32>
    %cst_25 = arith.constant 0.142857149 : f32
    %70 = vector.broadcast %cst_25 : f32 to vector<2x8x128xf32>
    %71 = arith.mulf %69, %70 : vector<2x8x128xf32>
    %72 = vector.shape_cast %71 : vector<2x8x128xf32> to vector<16x128xf32>
    %73 = vector.extract_strided_slice %59 {offsets = [0, 0], sizes = [16, 128], strides = [1, 1]} : vector<16x160xf32> to vector<16x128xf32>
    %74 = arith.addf %72, %73 : vector<16x128xf32>
    %75 = vector.broadcast %24 : vector<1x128xf32> to vector<16x128xf32>
    %76 = arith.addf %74, %75 : vector<16x128xf32>
    %77 = vector.extract_strided_slice %76 {offsets = [0, 0], sizes = [16, 96], strides = [1, 1]} : vector<16x128xf32> to vector<16x96xf32>
    %78 = arith.negf %77 : vector<16x96xf32>
    %79 = math.exp %78 : vector<16x96xf32>
    %cst_26 = arith.constant 1.000000e+00 : f32
    %80 = vector.broadcast %cst_26 : f32 to vector<16x96xf32>
    %81 = arith.addf %80, %79 : vector<16x96xf32>
    %82 = arith.divf %80, %81 : vector<16x96xf32>
    %83 = vector.extract_strided_slice %82 {offsets = [0, 0], sizes = [16, 32], strides = [1, 1]} : vector<16x96xf32> to vector<16x32xf32>
    %84 = vector.extract_strided_slice %82 {offsets = [0, 32], sizes = [16, 32], strides = [1, 1]} : vector<16x96xf32> to vector<16x32xf32>
    %85 = vector.extract_strided_slice %82 {offsets = [0, 64], sizes = [16, 32], strides = [1, 1]} : vector<16x96xf32> to vector<16x32xf32>
    %86 = vector.extract_strided_slice %76 {offsets = [0, 96], sizes = [16, 32], strides = [1, 1]} : vector<16x128xf32> to vector<16x32xf32>
    %87 = math.tanh %86 : vector<16x32xf32>
    %88 = arith.mulf %84, %56 : vector<16x32xf32>
    %89 = arith.mulf %83, %87 : vector<16x32xf32>
    %90 = arith.addf %88, %89 : vector<16x32xf32>
    %91 = math.tanh %90 : vector<16x32xf32>
    %92 = arith.mulf %85, %91 : vector<16x32xf32>
    %c144 = arith.constant 144 : index
    %c0_27 = arith.constant 0 : index
    %93 = vector.load %arg2[%c144, %c0_27] : memref<216x256xf32, #tpu.memory_space<vmem>>, vector<32x32xf32>
    %cst_28 = arith.constant dense<0.000000e+00> : vector<16x32xf32>
    %94 = tpu.matmul %92, %93, %cst_28 {dimension_numbers = #tpu.dot_dimension_numbers<[1], [0], [0], [1], [0, 0, 1, 1], [], []>} : vector<16x32xf32>, vector<32x32xf32>, vector<16x32xf32> -> vector<16x32xf32>
    %95 = arith.addf %8, %94 : vector<16x32xf32>
    %c40 = arith.constant 40 : index
    %c0_29 = arith.constant 0 : index
    %96 = vector.load %arg3[%c40, %c0_29] : memref<64x128xf32, #tpu.memory_space<vmem>>, vector<1x32xf32>
    %97 = vector.broadcast %96 : vector<1x32xf32> to vector<16x32xf32>
    %98 = arith.addf %95, %97 : vector<16x32xf32>
    %99 = math.tanh %98 : vector<16x32xf32>
    %c176 = arith.constant 176 : index
    %c0_30 = arith.constant 0 : index
    %100 = vector.load %arg2[%c176, %c0_30] : memref<216x256xf32, #tpu.memory_space<vmem>>, vector<32x32xf32>
    %cst_31 = arith.constant dense<0.000000e+00> : vector<16x32xf32>
    %101 = tpu.matmul %99, %100, %cst_31 {dimension_numbers = #tpu.dot_dimension_numbers<[1], [0], [0], [1], [0, 0, 1, 1], [], []>} : vector<16x32xf32>, vector<32x32xf32>, vector<16x32xf32> -> vector<16x32xf32>
    %c48_32 = arith.constant 48 : index
    %c0_33 = arith.constant 0 : index
    %102 = vector.load %arg3[%c48_32, %c0_33] : memref<64x128xf32, #tpu.memory_space<vmem>>, vector<1x32xf32>
    %103 = vector.broadcast %102 : vector<1x32xf32> to vector<16x32xf32>
    %104 = arith.addf %101, %103 : vector<16x32xf32>
    %105 = math.tanh %104 : vector<16x32xf32>
    %c208 = arith.constant 208 : index
    %c0_34 = arith.constant 0 : index
    %106 = vector.load %arg2[%c208, %c0_34] : memref<216x256xf32, #tpu.memory_space<vmem>>, vector<1x32xf32>
    %cst_35 = arith.constant dense<0.000000e+00> : vector<1x16xf32>
    %107 = tpu.matmul %106, %105, %cst_35 {dimension_numbers = #tpu.dot_dimension_numbers<[1], [1], [0], [0], [0, 0, 1, 0], [], []>} : vector<1x32xf32>, vector<16x32xf32>, vector<1x16xf32> -> vector<1x16xf32>
    %c56 = arith.constant 56 : index
    %c0_36 = arith.constant 0 : index
    %108 = vector.load %arg3[%c56, %c0_36] : memref<64x128xf32, #tpu.memory_space<vmem>>, vector<1x1xf32>
    %109 = vector.broadcast %108 : vector<1x1xf32> to vector<1x16xf32>
    %110 = arith.addf %107, %109 : vector<1x16xf32>
    %111 = math.tanh %110 : vector<1x16xf32>
    %c0_37 = arith.constant 0 : index
    %c0_38 = arith.constant 0 : index
    %112 = vector.load %arg4[%c0_37, %c0_38] : memref<1x16xf32, #tpu.memory_space<vmem>>, vector<1x16xf32>
    tpu.vector_store %arg4[%c0_37, %c0_38], %111 {strides = array<i32>} : memref<1x16xf32, #tpu.memory_space<vmem>>, vector<1x16xf32>,
    return
  }
  func.func @transform_0(%arg0: i32) -> (i32, i32) {
    %c0_i32 = arith.constant 0 : i32
    %c0_i32_0 = arith.constant 0 : i32
    return %arg0, %c0_i32 : i32, i32
  }
  func.func @transform_1(%arg0: i32) -> (i32, i32) {
    %c0_i32 = arith.constant 0 : i32
    %c0_i32_0 = arith.constant 0 : i32
    %c0_i32_1 = arith.constant 0 : i32
    return %c0_i32, %c0_i32_0 : i32, i32
  }
  func.func @transform_2(%arg0: i32) -> (i32, i32) {
    %c0_i32 = arith.constant 0 : i32
    %c0_i32_0 = arith.constant 0 : i32
    %c0_i32_1 = arith.constant 0 : i32
    return %c0_i32, %c0_i32_0 : i32, i32
  }
  func.func @transform_3(%arg0: i32) -> (i32, i32) {
    %c0_i32 = arith.constant 0 : i32
    %c0_i32_0 = arith.constant 0 : i32
    return %c0_i32, %arg0 : i32, i32
  }
}

</mosaic_0001>

<bundles_post_ra>
// kernel: tpu_custom_call.1
= control target key start
LH: loop header
LB: loop body
LE: loop exit
PB: predicated region body
PF: predicated region fallthrough
CT: control target
= control target key end

     0   :  { %8 = vsyncpa [#allocation3], 0  ;;  %s1695_s0 = inlined_call_operand.hbm [shape: f32[16,16], index: 0, kind: input, shape index: {}]   ;;  %s1696_s1 = inlined_call_operand.hbm [shape: f32[216,256], index: 1, kind: input, shape index: {}]   ;;  %s1697_s2 = inlined_call_operand.hbm [shape: f32[64,128], index: 2, kind: input, shape index: {}]   ;;  %s1698_s3 = inlined_call_operand.hbm [shape: f32[1,16], index: 3, kind: output, shape index: {}]  }
   0x1   :  { %9 = vsyncpa [#allocation6], 0 }
   0x2   :  { %10 = vsyncpa [#allocation4], 0  ;;  %s1541_s12 = smov [#allocation5]   ;;  %s1447_s16 = scalar_lea.hbm %s1696_s1, 6912 }
   0x3   :  { %s28_s13 = sshll.u32 %s1541_s12, 4  ;;  %p1448_p0 = scmp.ne.s32.totalorder %s1696_s1, %s1447_s16  ;;  %s29_s13 = int_to_ptr.vmem [resolvable:$true] %s28_s13 }
   0x4   :  { %p1451_p1 = scmp.lt.u32.totalorder %s1447_s16, %s1696_s1 }
   0x6   :  { %p1453_p2 = pnand %p1451_p1, %p1448_p0 }
   0x8   :  { %1456 = shalt.err (!%p1453_p2)
}
   0x9   :  { %s1457_s21 = scalar_lea.vmem %s29_s13, 6912  ;;  %p1462_p4 = scmp.lt.s32.totalorder %s29_s13, %s29_s13 }
   0xa   :  { %p1458_p3 = scmp.ne.s32.totalorder %s29_s13, %s1457_s21  ;;  %p1463_p5 = scmp.lt.s32.totalorder %s1457_s21, %s1457_s21 }
   0xc   :  { %p1464_p6 = por %p1463_p5, %p1462_p4 }
   0xe   :  { %p1465_p7 = pnand %p1464_p6, %p1458_p3 }
  0x10   :  { %1468 = shalt.err (!%p1465_p7)
}
  0x11   :  { %s1542_s22 = smov 256   ;;  %s1543_s23 = smov 16  }
  0x12   :  { %34 = dma.hbm_to_vmem [thread:$0]  %s1696_s1, 6912, %s29_s13, [#allocation6], %s1542_s22, %s1542_s22, %s1543_s23  }
  0x13   :  { %s1544_s26 = smov [#allocation2]   ;;  %s1469_s30 = scalar_lea.hbm %s1695_s0, 256 }
  0x14   :  { %s16_s27 = sshll.u32 %s1544_s26, 4  ;;  %p1470_p8 = scmp.ne.s32.totalorder %s1695_s0, %s1469_s30  ;;  %s17_s27 = int_to_ptr.vmem [resolvable:$true] %s16_s27 }
  0x15   :  { %p1473_p9 = scmp.lt.u32.totalorder %s1469_s30, %s1695_s0 }
  0x17   :  { %p1475_p10 = pnand %p1473_p9, %p1470_p8 }
  0x19   :  { %1478 = shalt.err (!%p1475_p10)
}
  0x1a   :  { %s1479_s8 = scalar_lea.vmem %s17_s27, 256  ;;  %p1484_p12 = scmp.lt.s32.totalorder %s17_s27, %s17_s27 }
  0x1b   :  { %p1480_p11 = scmp.ne.s32.totalorder %s17_s27, %s1479_s8  ;;  %p1485_p13 = scmp.lt.s32.totalorder %s1479_s8, %s1479_s8 }
  0x1d   :  { %p1486_p0 = por %p1485_p13, %p1484_p12 }
  0x1f   :  { %p1487_p1 = pnand %p1486_p0, %p1480_p11 }
  0x21   :  { %1490 = shalt.err (!%p1487_p1)
}
  0x22   :  { %s1545_s1 = smov 128   ;;  %s1546_s9 = smov 8  }
  0x23   :  { %22 = dma.hbm_to_vmem [thread:$0]  %s1695_s0, 256, %s17_s27, [#allocation3], %s1545_s1, %s1545_s1, %s1546_s9  }
  0x24   :  { %s1547_s12 = smov [#allocation7]   ;;  %s1491_s16 = scalar_lea.hbm %s1697_s2, 1024 }
  0x25   :  { %s40_s13 = sshll.u32 %s1547_s12, 4  ;;  %p1492_p2 = scmp.ne.s32.totalorder %s1697_s2, %s1491_s16  ;;  %s41_s13 = int_to_ptr.vmem [resolvable:$true] %s40_s13 }
  0x26   :  { %p1495_p3 = scmp.lt.u32.totalorder %s1491_s16, %s1697_s2 }
  0x28   :  { %p1497_p4 = pnand %p1495_p3, %p1492_p2 }
  0x2a   :  { %1500 = shalt.err (!%p1497_p4)
}
  0x2b   :  { %s1501_s21 = scalar_lea.vmem %s41_s13, 1024  ;;  %p1506_p6 = scmp.lt.s32.totalorder %s41_s13, %s41_s13 }
  0x2c   :  { %p1502_p5 = scmp.ne.s32.totalorder %s41_s13, %s1501_s21  ;;  %p1507_p7 = scmp.lt.s32.totalorder %s1501_s21, %s1501_s21 }
  0x2e   :  { %p1508_p8 = por %p1507_p7, %p1506_p6 }
  0x30   :  { %p1509_p9 = pnand %p1508_p8, %p1502_p5 }
  0x32   :  { %1512 = shalt.err (!%p1509_p9)
}
  0x33   :  { %46 = dma.hbm_to_vmem [thread:$0]  %s1697_s2, 1024, %s41_s13, [#allocation6], %s1545_s1, %s1545_s1, %s1546_s9  }
  0x34   :  { %1535 = dma.done.wait [#allocation3], 256  }
  0x35   :  { %1536 = vsyncadd [#allocation3], 4294967040 }
  0x36   :  { %1537 = dma.done.wait [#allocation6], 7936  }
  0x37   :  { %1538 = vsyncadd [#allocation6], 4294959360  ;;  %vm60_vm0 = vcmask 130048   ;;  %v58_v0 = vld [vmem:[#allocation5] sm:$0xff]  ;;  %v59_v1 = vld [vmem:[#allocation5 + $0x10] sm:$0xff]  ;;  %vm160_vm1 = vcmask 261120  }
  0x38   :  { %v56_v2 = vld [vmem:[#allocation2] sm:$0xff]  ;;  %v1300_v3 = vpack.c.bf16 %v59_v1, %v58_v0  ;;  %v57_v4 = vld [vmem:[#allocation2 + $0x8] sm:$0xff]  ;;  %v151_v5 = vld [vmem:[#allocation5 + $0x20] sm:$0xff]  ;;  %v1548_v43 = vmov 0.0   ;;  %s1549_s2 = smov 32   ;;  %s1550_s23 = smov 64  }
  0x39   :  { %1224 = vmatprep.mubr.msk.f32.mxu0 %vm60_vm0, %v56_v2  ;;  %v152_v6 = vld [vmem:[#allocation5 + $0x30] sm:$0xff]  ;;  %v153_v7 = vld [vmem:[#allocation5 + $0x40] sm:$0xff]  ;;  %v335_v24 = vld [vmem:[#allocation5 + $0xa8] sm:$0xff]  ;;  %s1551_s24 = smov 96   ;;  %vm1553_vm2 = vmmov 0   ;;  %s1555_s25 = smov [#allocation8]  }
  0x3a   :  { %1301 = vmatprep.subr.bf16.mxu0 %v1300_v3  ;;  %v1304_v8 = vpack.c.bf16 %v152_v6, %v151_v5  ;;  %v154_v9 = vld [vmem:[#allocation5 + $0x50] sm:$0xff]  ;;  %v244_v18 = vld [vmem:[#allocation5 + $0x60] sm:$0xff]  ;;  %v337_v25 = vld [vmem:[#allocation5 + $0xb8] sm:$0xff]  ;;  %s1135_s26 = sshll.u32 %s1555_s25, 4  ;;  %vm1127_vm4 = vcmask 122880   ;;  %s1136_s26 = int_to_ptr.vmem [resolvable:$true] %s1135_s26 }
  0x3b   :  { %1303 = vmatpush3.bf16.msra.mxu0 %v1300_v3  ;;  %v1308_v10 = vpack.c.bf16 %v154_v9, %v153_v7  ;;  %v1147_v11 = vld [vmem:[#allocation7] ss:$0 sm:$0xff]  ;;  %v246_v20 = vld [vmem:[#allocation5 + $0x80] sm:$0xff]  ;;  %v1320_v27 = vpack.c.bf16 %v337_v25, %v335_v24  ;;  %v1148_v30 = vld [vmem:[#allocation7 + $0x8] ss:$0 sm:$0xff]  ;;  %s1513_s27 = scalar_lea.vmem %s1136_s26, 16  ;;  %p1518_p11 = scmp.lt.s32.totalorder %s1136_s26, %s1136_s26 }
  0x3c   :  { %1305 = vmatprep.subr.bf16.mxu1 %v1304_v8  ;;  %v245_v19 = vld [vmem:[#allocation5 + $0x70] sm:$0xff]  ;;  %v334_v26 = vld [vmem:[#allocation5 + $0xa0] sm:$0xff]  ;;  %v339_v37 = vld [vmem:[#allocation5 + $0xc8] sm:$0xff]  ;;  %p1514_p10 = scmp.ne.s32.totalorder %s1136_s26, %s1513_s27  ;;  %s1517_s28 = scalar_lea.vmem %s1136_s26, 32 }
  0x3d   :  { %1307 = vmatpush3.bf16.msra.mxu1 %v1304_v8  ;;  %v1312_v21 = vpack.c.bf16 %v245_v19, %v244_v18  ;;  %v247_v22 = vld [vmem:[#allocation5 + $0x90] sm:$0xff]  ;;  %v341_v38 = vld [vmem:[#allocation5 + $0xd8] sm:$0xff]  ;;  %v338_v40 = vld [vmem:[#allocation5 + $0xc0] sm:$0xff]  ;;  %p1519_p12 = scmp.lt.s32.totalorder %s1517_s28, %s1513_s27 }
  0x3e   :  { %1225 = vmatmul.mubr.msk.f32.vlgmr.msra.gmra.mrb[0].mxu0 %vm60_vm0, %v57_v4  ;;  %1309 = vmatprep.subr.bf16.mxu1 %v1308_v10  ;;  %v1316_v23 = vpack.c.bf16 %v247_v22, %v246_v20  ;;  %v336_v28 = vld [vmem:[#allocation5 + $0xb0] sm:$0xff]  ;;  %v1324_v39 = vpack.c.bf16 %v341_v38, %v339_v37  ;;  %v1151_v44 = vld [vmem:[#allocation7 + $0x10] ss:$0 sm:$0xff]  ;;  %v1627_v55 = vld [vmem:[#allocation7 + $0x18] ss:$0 sm:$0xff] }
  0x3f   :  { %1313 = vmatprep.subr.bf16.mxu0 %v1312_v21  ;;  %v1322_v29 = vpack.c.bf16 %v336_v28, %v334_v26  ;;  %v340_v41 = vld [vmem:[#allocation5 + $0xd0] sm:$0xff]  ;;  %v342_v49 = vld [vmem:[#allocation5 + $0xe0] sm:$0xff]  ;;  %vm1370_vm3 = vmpackc.low %vm160_vm1, %vm160_vm1  ;;  %p1520_p13 = por %p1519_p12, %p1518_p11 }
  0x40   :  { %1315 = vmatpush3.bf16.msra.mxu0 %v1312_v21  ;;  %v1326_v42 = vpack.c.bf16 %v340_v41, %v338_v40  ;;  %v343_v50 = vld [vmem:[#allocation5 + $0xf0] sm:$0xff]  ;;  %v344_v51 = vld [vmem:[#allocation5 + $0x100] sm:$0xff] }
  0x41   :  { %1311 = vmatpush3.bf16.msra.mxu1 %v1308_v10  ;;  %1317 = vmatprep.subr.bf16.mxu0 %v1316_v23  ;;  %v1328_v52 = vpack.c.bf16 %v343_v50, %v342_v49  ;;  %v345_v53 = vld [vmem:[#allocation5 + $0x110] sm:$0xff]  ;;  %p1521_p0 = pnand %p1520_p13, %p1514_p10 }
  0x42   :  { %1321 = vmatprep.subr.bf16.mxu1 %v1320_v27  ;;  %v1332_v54 = vpack.c.bf16 %v345_v53, %v344_v51  ;;  %v1633_v20 = vld [vmem:[#allocation7 + $0x20] ss:$0 sm:$0xff] }
  0x44   :  { %1319 = vmatpush3.bf16.msra.mxu0 %v1316_v23 }
  0x45   :  { %1329 = vmatprep.subr.bf16.mxu0 %v1328_v52 }
 0x111   :  { %v1612_v12 = vpop.f32.mrb[0].mxu0 }
 0x112   :  { %v148_v13 = vadd.f32 %v1612_v12, %v1147_v11  ;;  %v1615_v14 = vpop.f32.mrb[1].mxu0 }
 0x113   :  { %v147_v15 = vadd.f32 %v1147_v11, %v1615_v14 }
 0x115   :  { %1389 = vtanh.f32 %v147_v15 }
 0x116   :  { %1391 = vtanh.f32 %v148_v13 }
 0x11f   :  { %v1390_v16 = vpop.eup %1389 }
 0x120   :  { %v1392_v17 = vpop.eup %1391  ;;  %1235 = vmatprep.mubr.msk.f32.mxu1 %vm160_vm1, %v1390_v16 }
 0x121   :  { %1236 = vmatmul.mubr.msk.f32.vlgmr.msra.gmra.mrb[0].mxu1 %vm160_vm1, %v1392_v17 }
 0x122   :  { %1323 = vmatpush1.bf16.msra.mxu1 %v1322_v29  ;;  %418 = vmatprep.mubr.f32.mxu1 %v1548_v43 }
 0x123   :  { %1325 = vmatprep.subr.bf16.mxu1 %v1324_v39 }
 0x126   :  { %1327 = vmatpush1.bf16.msra.mxu1 %v1326_v42 }
 0x127   :  { %1337 = vmatprep.subr.bf16.mxu1 %v1320_v27 }
 0x1f4   :  { %v1237_v31 = vpop.f32.mrb[0].mxu1 }
 0x1f5   :  { %v239_v32 = vadd.f32 %v1237_v31, %v1148_v30  ;;  %v233_v33 = vpop.f32.mrb[1].mxu1 }
 0x1f6   :  { %v234_v34 = vadd.f32 %v1148_v30, %v233_v33 }
 0x1f8   :  { %1393 = vtanh.f32 %v234_v34 }
 0x1f9   :  { %1395 = vtanh.f32 %v239_v32 }
 0x202   :  { %v1394_v35 = vpop.eup %1393 }
 0x203   :  { %v1396_v36 = vpop.eup %1395  ;;  %1246 = vmatprep.mubr.msk.f32.mxu0 %vm160_vm1, %v1394_v35 }
 0x204   :  { %1247 = vmatmul.mubr.msk.f32.vlgmr.msra.gmra.mrb[2].mxu0 %vm160_vm1, %v1396_v36 }
 0x205   :  { %1331 = vmatpush3.bf16.msra.mxu0 %v1328_v52 }
 0x206   :  { %1333 = vmatprep.subr.bf16.mxu0 %v1332_v54 }
 0x209   :  { %1335 = vmatpush3.bf16.msra.mxu0 %v1332_v54 }
 0x20a   :  { %1345 = vmatprep.subr.bf16.mxu0 %v1328_v52 }
 0x2d7   :  { %v1248_v45 = vpop.f32.mrb[2].mxu0 }
 0x2d8   :  { %v325_v46 = vpop.f32.mrb[3].mxu0  ;;  %v331_v48 = vadd.f32 %v1248_v45, %v1151_v44 }
 0x2d9   :  { %v326_v47 = vadd.f32 %v1151_v44, %v325_v46 }
 0x2db   :  { %1154 = vmatmul.mubr.msk.f32.vlgmr.msra.gmra.mrb[2].mxu1 %vm160_vm1, %v326_v47 }
 0x2dc   :  { %424 = vmatprep.mubr.f32.mxu1 %v1548_v43  ;;  %1339 = vmatpush1.bf16.msra.mxu1 %v1322_v29 }
 0x2dd   :  { %1341 = vmatprep.subr.bf16.mxu1 %v1324_v39 }
 0x2df   :  { %1155 = vmatmul.mubr.msk.f32.gmra.mrb[4].mxu1 %vm160_vm1, %v331_v48 }
 0x2e0   :  { %1343 = vmatpush1.bf16.msra.mxu1 %v1326_v42  ;;  %666 = vmatprep.mubr.f32.mxu1 %v1548_v43 }
 0x3ae   :  { %v420_v56 = vpop.f32.mrb[2].mxu1 }
 0x3af   :  { %v422_v57 = vpop.f32.mrb[3].mxu1 }
 0x3b0   :  { %v435_v58 = vadd.f32 %v1627_v55, %v422_v57 }
 0x3b2   :  { %1397 = vtanh.f32 %v435_v58  ;;  %v426_v59 = vpop.f32.mrb[4].mxu1 }
 0x3b3   :  { %v428_v60 = vpop.f32.mrb[5].mxu1 }
 0x3b4   :  { %v436_v61 = vadd.f32 %v1627_v55, %v428_v60 }
 0x3b6   :  { %1399 = vtanh.f32 %v436_v61 }
 0x3bc   :  { %v1398_v62 = vpop.eup %1397 }
 0x3bd   :  { %1257 = vmatprep.mubr.msk.f32.mxu0 %vm160_vm1, %v1398_v62 }
 0x3c0   :  { %v1400_v63 = vpop.eup %1399 }
 0x3c1   :  { %1258 = vmatmul.mubr.msk.f32.vlgmr.msra.gmra.mrb[4].mxu0 %vm160_vm1, %v1400_v63 }
 0x3c2   :  { %1347 = vmatpush3.bf16.msra.mxu0 %v1328_v52 }
 0x3c3   :  { %1349 = vmatprep.subr.bf16.mxu0 %v1332_v54 }
 0x3c6   :  { %1351 = vmatpush3.bf16.msra.mxu0 %v1332_v54 }
 0x494   :  { %v1259_v0 = vpop.f32.mrb[4].mxu0 }
 0x495   :  { %v526_v1 = vrot.slane %v1259_v0, 4  ;;  %v511_v2 = vpop.f32.mrb[5].mxu0 }
 0x496   :  { %v520_v3 = vrot.slane %v511_v2, 4 }
 0x497   :  { %v527_v4 = vadd.f32 %v1259_v0, %v526_v1 }
 0x498   :  { %v521_v5 = vadd.f32 %v520_v3, %v511_v2 }
 0x499   :  { %v528_v6 = vrot.slane %v527_v4, 2 }
 0x49a   :  { %v522_v7 = vrot.slane %v521_v5, 2 }
 0x49b   :  { %v529_v8 = vadd.f32 %v528_v6, %v527_v4 }
 0x49c   :  { %v523_v9 = vadd.f32 %v522_v7, %v521_v5 }
 0x49d   :  { %v530_v10 = vrot.slane %v529_v8, 1 }
 0x49e   :  { %v524_v11 = vrot.slane %v523_v9, 1 }
 0x49f   :  { %v531_v13 = vadd.f32 %v530_v10, %v529_v8 }
 0x4a0   :  { %v525_v15 = vadd.f32 %v524_v11, %v523_v9 }
 0x4a1   :  { %v533_v16 = vsub.f32 %v531_v13, %v1259_v0 }
 0x4a2   :  { %v532_v17 = vsub.f32 %v525_v15, %v511_v2 }
 0x4a3   :  { %v535_v18 = vmul.f32 0.14285715, %v533_v16 }
 0x4a4   :  { %v534_v19 = vmul.f32 0.14285715, %v532_v17 }
 0x4a5   :  { %v537_v21 = vadd.f32 %v535_v18, %v426_v59 }
 0x4a6   :  { %v536_v22 = vadd.f32 %v534_v19, %v420_v56 }
 0x4a7   :  { %v543_v24 = vadd.f32 %v1633_v20, %v537_v21 }
 0x4a8   :  { %v542_v23 = vadd.f32 %v1633_v20, %v536_v22 }
 0x4a9   :  { %v1161_v28 = vmul.f32 -1.442695, %v543_v24 }
 0x4aa   :  { %1401 = vtanh.f32 %v542_v23  ;;  %v1160_v27 = vmul.f32 -1.442695, %v542_v23 }
 0x4ab   :  { %1403 = vtanh.f32 %v543_v24 }
 0x4ac   :  { %1405 = vpow2.f32 %v1160_v27 }
 0x4ad   :  { %1407 = vpow2.f32 %v1161_v28 }
 0x4b4   :  { %v1402_v25 = vpop.eup %1401 }
 0x4b5   :  { %562 = vrot.lane.b32.xlu0 %v1402_v25, %s1549_s2  ;;  %v1404_v26 = vpop.eup %1403 }
 0x4b6   :  { %v1406_v29 = vpop.eup %1405 }
 0x4b7   :  { %v550_v30 = vadd.f32 1.0, %v1406_v29  ;;  %v1408_v31 = vpop.eup %1407 }
 0x4b8   :  { %v551_v32 = vadd.f32 1.0, %v1408_v31 }
 0x4b9   :  { %564 = vrot.lane.b32.xlu0 %v1404_v26, %s1549_s2  ;;  %1409 = vrcp.f32 %v550_v30 }
 0x4ba   :  { %1411 = vrcp.f32 %v551_v32 }
 0x4c3   :  { %v1410_v33 = vpop.eup %1409 }
 0x4c4   :  { %v1412_v36 = vpop.eup %1411  ;;  %v558_v39 = vmul.f32 0.0, %v1410_v33 }
 0x4c5   :  { %v559_v42 = vmul.f32 0.0, %v1412_v36 }
 0x527   :  { %v563_v34 = vpop.permute.xlu0 %562 }
 0x528   :  { %v568_v35 = vmul.f32 %v1410_v33, %v563_v34 }
 0x52a   :  { %572 = vrot.lane.b32.xlu1 %v568_v35, %s1549_s2 }
 0x52b   :  { %v565_v37 = vpop.permute.xlu0 %564 }
 0x52c   :  { %v569_v38 = vmul.f32 %v1412_v36, %v565_v37 }
 0x52e   :  { %574 = vrot.lane.b32.xlu1 %v569_v38, %s1549_s2 }
 0x59c   :  { %v573_v40 = vpop.permute.xlu1 %572 }
 0x59d   :  { %v1641_v41 = vadd.f32 %v573_v40, %v558_v39 }
 0x59f   :  { %1413 = vtanh.f32 %v1641_v41 }
 0x5a0   :  { %v575_v44 = vpop.permute.xlu1 %574 }
 0x5a1   :  { %v1644_v45 = vadd.f32 %v575_v44, %v559_v42  ;;  %v832_v44 = vld [vmem:[#allocation5 + $0x120] sm:$0xff] }
 0x5a3   :  { %1415 = vtanh.f32 %v1644_v45 }
 0x5a9   :  { %v1414_v46 = vpop.eup %1413 }
 0x5aa   :  { %584 = vrot.lane.b32.xlu0 %v1414_v46, %s1549_s2  ;;  %v833_v46 = vld [vmem:[#allocation5 + $0x130] sm:$0xff] }
 0x5ad   :  { %v1416_v47 = vpop.eup %1415 }
 0x5ae   :  { %586 = vrot.lane.b32.xlu1 %v1416_v47, %s1549_s2  ;;  %v834_v47 = vld [vmem:[#allocation5 + $0x140] sm:$0xff] }
 0x61c   :  { %v585_v48 = vpop.permute.xlu0 %584 }
 0x61d   :  { %v590_v49 = vmul.f32 %v1410_v33, %v585_v48  ;;  %v1352_v48 = vpack.c.bf16 %v833_v46, %v832_v44 }
 0x61f   :  { %594 = vrot.lane.b32.xlu0 %v590_v49, %s1550_s23  ;;  %v835_v49 = vld [vmem:[#allocation5 + $0x150] sm:$0xff]  ;;  %1353 = vmatprep.subr.bf16.mxu1 %v1352_v48 }
 0x620   :  { %v587_v50 = vpop.permute.xlu1 %586 }
 0x621   :  { %v591_v51 = vmul.f32 %v1412_v36, %v587_v50  ;;  %v1356_v50 = vpack.c.bf16 %v835_v49, %v834_v47 }
 0x623   :  { %596 = vrot.lane.b32.xlu1 %v591_v51, %s1550_s23 }
 0x691   :  { %v595_v52 = vpop.permute.xlu0 %594 }
 0x692   :  { %1162 = vmatmul.mubr.msk.f32.vlgmr.msra.gmra.mrb[6].mxu1 %vm160_vm1, %v595_v52 }
 0x693   :  { %672 = vmatprep.mubr.f32.mxu1 %v1548_v43  ;;  %1355 = vmatpush3.bf16.msra.mxu1 %v1352_v48 }
 0x694   :  { %1357 = vmatprep.subr.bf16.mxu1 %v1356_v50 }
 0x695   :  { %v597_v53 = vpop.permute.xlu1 %596 }
 0x696   :  { %1163 = vmatmul.mubr.msk.f32.gmra.mrb[8].mxu1 %vm160_vm1, %v597_v53 }
 0x697   :  { %1359 = vmatpush3.bf16.msra.mxu1 %v1356_v50 }
 0x765   :  { %v668_v54 = vpop.f32.mrb[6].mxu1 }
 0x766   :  { %v670_v56 = vpop.f32.mrb[7].mxu1 }
 0x767   :  { %v679_v57 = vadd.f32 %v1627_v55, %v670_v56 }
 0x769   :  { %1417 = vtanh.f32 %v679_v57  ;;  %v674_v58 = vpop.f32.mrb[8].mxu1 }
 0x76a   :  { %v676_v59 = vpop.f32.mrb[9].mxu1 }
 0x76b   :  { %v680_v60 = vadd.f32 %v1627_v55, %v676_v59 }
 0x76d   :  { %1419 = vtanh.f32 %v680_v60  ;;  %v1170_v60 = vld [vmem:[#allocation7 + $0x28] ss:$0 sm:$0xff] }
 0x773   :  { %v1418_v61 = vpop.eup %1417 }
 0x774   :  { %1268 = vmatprep.mubr.msk.f32.mxu0 %vm160_vm1, %v1418_v61  ;;  %v944_v61 = vld [vmem:[#allocation5 + $0x160] sm:$0xff] }
 0x777   :  { %v1420_v62 = vpop.eup %1419 }
 0x778   :  { %1269 = vmatmul.mubr.msk.f32.vlgmr.msra.gmra.mrb[6].mxu0 %vm160_vm1, %v1420_v62  ;;  %v945_v62 = vld [vmem:[#allocation5 + $0x170] sm:$0xff] }
 0x84b   :  { %v1270_v63 = vpop.f32.mrb[6].mxu0 }
 0x84c   :  { %v770_v0 = vrot.slane %v1270_v63, 4  ;;  %v755_v1 = vpop.f32.mrb[7].mxu0 }
 0x84d   :  { %v764_v2 = vrot.slane %v755_v1, 4 }
 0x84e   :  { %v771_v3 = vadd.f32 %v1270_v63, %v770_v0  ;;  %v1360_v0 = vpack.c.bf16 %v945_v62, %v944_v61 }
 0x84f   :  { %v765_v4 = vadd.f32 %v764_v2, %v755_v1 }
 0x850   :  { %v772_v5 = vrot.slane %v771_v3, 2  ;;  %1361 = vmatprep.subr.bf16.mxu0 %v1360_v0 }
 0x851   :  { %v766_v6 = vrot.slane %v765_v4, 2  ;;  %1363 = vmatpush3.bf16.msra.mxu0 %v1360_v0 }
 0x852   :  { %v773_v7 = vadd.f32 %v772_v5, %v771_v3 }
 0x853   :  { %v767_v8 = vadd.f32 %v766_v6, %v765_v4 }
 0x854   :  { %v774_v9 = vrot.slane %v773_v7, 1 }
 0x855   :  { %v768_v10 = vrot.slane %v767_v8, 1 }
 0x856   :  { %v775_v55 = vadd.f32 %v774_v9, %v773_v7 }
 0x857   :  { %v769_v11 = vadd.f32 %v768_v10, %v767_v8 }
 0x858   :  { %v777_v13 = vsub.f32 %v775_v55, %v1270_v63  ;;  %v946_v63 = vld [vmem:[#allocation5 + $0x180] sm:$0xff] }
 0x859   :  { %v776_v15 = vsub.f32 %v769_v11, %v755_v1  ;;  %v947_v1 = vld [vmem:[#allocation5 + $0x190] sm:$0xff] }
 0x85a   :  { %v779_v16 = vmul.f32 0.14285715, %v777_v13  ;;  %v1364_v2 = vpack.c.bf16 %v947_v1, %v946_v63 }
 0x85b   :  { %v778_v17 = vmul.f32 0.14285715, %v776_v15  ;;  %v1552_v15 = vmov 0.0|0.0  }
 0x85c   :  { %v781_v18 = vadd.f32 %v779_v16, %v674_v58  ;;  %1365 = vmatprep.subr.bf16.mxu0 %v1364_v2  ;;  %1368 = vmatprep.subr.bf16.mxu1 %v1552_v15  ;;  %v1171_v16 = vld [vmem:[#allocation7 + $0x30] ss:$0 sm:$0xff] }
 0x85d   :  { %v780_v19 = vadd.f32 %v778_v17, %v668_v54  ;;  %1367 = vmatpush3.bf16.msra.mxu0 %v1364_v2 }
 0x85e   :  { %v783_v21 = vadd.f32 %v1633_v20, %v781_v18 }
 0x85f   :  { %v782_v22 = vadd.f32 %v1633_v20, %v780_v19 }
 0x860   :  { %1421 = vtanh.f32 %v783_v21  ;;  %v1167_v25 = vmul.f32 -1.442695, %v783_v21 }
 0x861   :  { %1423 = vtanh.f32 %v782_v22  ;;  %v1166_v26 = vmul.f32 -1.442695, %v782_v22 }
 0x862   :  { %1425 = vpow2.f32 %v1167_v25 }
 0x863   :  { %1427 = vpow2.f32 %v1166_v26 }
 0x86a   :  { %v1422_v23 = vpop.eup %1421 }
 0x86b   :  { %v1424_v24 = vpop.eup %1423  ;;  %804 = vrot.lane.b32.xlu1 %v1422_v23, %s1549_s2 }
 0x86c   :  { %802 = vrot.lane.b32.xlu0 %v1424_v24, %s1549_s2  ;;  %v1426_v27 = vpop.eup %1425 }
 0x86d   :  { %v1428_v28 = vpop.eup %1427  ;;  %v791_v29 = vadd.f32 1.0, %v1426_v27 }
 0x86e   :  { %v790_v30 = vadd.f32 1.0, %v1428_v28 }
 0x86f   :  { %1429 = vrcp.f32 %v791_v29 }
 0x870   :  { %1431 = vrcp.f32 %v790_v30 }
 0x879   :  { %v1430_v31 = vpop.eup %1429 }
 0x87a   :  { %v1432_v32 = vpop.eup %1431  ;;  %v799_v36 = vmul.f32 %v1430_v31, %v1644_v45 }
 0x87b   :  { %v798_v38 = vmul.f32 %v1432_v32, %v1641_v41 }
 0x8dd   :  { %v805_v20 = vpop.permute.xlu1 %804 }
 0x8de   :  { %v809_v33 = vmul.f32 %v1430_v31, %v805_v20  ;;  %v803_v34 = vpop.permute.xlu0 %802 }
 0x8df   :  { %v808_v35 = vmul.f32 %v1432_v32, %v803_v34 }
 0x8e0   :  { %814 = vrot.lane.b32.xlu1 %v809_v33, %s1549_s2 }
 0x8e1   :  { %812 = vrot.lane.b32.xlu0 %v808_v35, %s1549_s2 }
 0x952   :  { %v815_v37 = vpop.permute.xlu1 %814 }
 0x953   :  { %v819_v39 = vadd.f32 %v815_v37, %v799_v36  ;;  %v813_v40 = vpop.permute.xlu0 %812 }
 0x954   :  { %v818_v42 = vadd.f32 %v813_v40, %v798_v38 }
 0x955   :  { %1433 = vtanh.f32 %v819_v39 }
 0x956   :  { %1435 = vtanh.f32 %v818_v42 }
 0x95f   :  { %v1434_v51 = vpop.eup %1433 }
 0x960   :  { %v1436_v45 = vpop.eup %1435  ;;  %826 = vrot.lane.b32.xlu1 %v1434_v51, %s1549_s2 }
 0x961   :  { %824 = vrot.lane.b32.xlu0 %v1436_v45, %s1549_s2 }
 0x9d2   :  { %v827_v41 = vpop.permute.xlu1 %826 }
 0x9d3   :  { %v831_v52 = vmul.f32 %v1430_v31, %v827_v41  ;;  %v825_v53 = vpop.permute.xlu0 %824 }
 0x9d4   :  { %v830_v54 = vmul.f32 %v1432_v32, %v825_v53 }
 0x9d5   :  { %840 = vrot.lane.b32.xlu1 %v831_v52, %s1550_s23 }
 0x9d6   :  { %838 = vrot.lane.b32.xlu0 %v830_v54, %s1550_s23 }
 0xa47   :  { %v841_v57 = vpop.permute.xlu1 %840 }
 0xa48   :  { %v839_v56 = vpop.permute.xlu0 %838 }
 0xa49   :  { %1279 = vmatprep.mubr.msk.f32.mxu1 %vm160_vm1, %v839_v56 }
 0xa4a   :  { %1280 = vmatmul.mubr.msk.f32.vlgmr.msra.gmra.mrb[10].mxu1 %vm160_vm1, %v841_v57 }
 0xa4b   :  { %1297 = vmatprep.mubr.msk.f32.mxu1 %vm1553_vm2, %v1548_v43  ;;  %v1040_v43 = vld [vmem:[#allocation5 + $0x1a0] ss:$0 sm:$0xff] }
 0xb1d   :  { %v1281_v58 = vpop.f32.mrb[10].mxu1 }
 0xb1e   :  { %925 = vrot.lane.b32.xlu1 %v1281_v58, %s1549_s2  ;;  %v912_v59 = vpop.f32.mrb[11].mxu1 }
 0xb1f   :  { %923 = vrot.lane.b32.xlu0 %v912_v59, %s1549_s2 }
 0xb23   :  { %937 = vrot.lane.b32.xlu0 %v1170_v60, %s1549_s2 }
 0xb90   :  { %v926_v3 = vpop.permute.xlu1 %925 }
 0xb91   :  { %v924_v4 = vpop.permute.xlu0 %923  ;;  %v930_v5 = vadd.f32 %v1612_v12, %v926_v3  ;;  %v1041_v12 = vld [vmem:[#allocation7 + $0x38] sm:$0x1] }
 0xb92   :  { %v929_v6 = vadd.f32 %v924_v4, %v1615_v14  ;;  %v1554_v14 = vmov 0  }
 0xb93   :  { %1387 = vset.pattern.permute.xlu1 %v1554_v14  ;;  %1388 = vset.pattern.permute.xlu0 %v1554_v14 }
 0xb95   :  { %v938_v7 = vpop.permute.xlu0 %937 }
 0xb96   :  { %v940_v8 = vadd.f32 %v938_v7, %v929_v6  ;;  %v941_v9 = vadd.f32 %v938_v7, %v930_v5 }
 0xb98   :  { %1437 = vtanh.f32 %v940_v8 }
 0xb99   :  { %1439 = vtanh.f32 %v941_v9 }
 0xba2   :  { %v1438_v10 = vpop.eup %1437 }
 0xba3   :  { %v1440_v55 = vpop.eup %1439  ;;  %955 = vrot.lane.b32.xlu1 %v1438_v10, %s1551_s24 }
 0xba4   :  { %957 = vrot.lane.b32.xlu0 %v1440_v55, %s1551_s24 }
 0xba7   :  { %1044 = vperm.xlu1 %1387, %v1041_v12  }
 0xc15   :  { %v956_v11 = vpop.permute.xlu1 %955 }
 0xc16   :  { %v958_v13 = vpop.permute.xlu0 %957  ;;  %1290 = vmatprep.mubr.msk.f32.mxu0 %vm160_vm1, %v956_v11 }
 0xc17   :  { %1291 = vmatmul.mubr.msk.f32.vlgmr.msra.gmra.mrb[8].mxu0 %vm160_vm1, %v958_v13 }
 0xc26   :  { %v1045_v25 = vpop.permute.xlu1 %1044 }
 0xcea   :  { %v1292_v17 = vpop.f32.mrb[8].mxu0 }
 0xceb   :  { %v1035_v18 = vadd.f32 %v1292_v17, %v1171_v16  ;;  %v1029_v19 = vpop.f32.mrb[9].mxu0 }
 0xcec   :  { %v1030_v21 = vadd.f32 %v1171_v16, %v1029_v19 }
 0xced   :  { %1441 = vtanh.f32 %v1035_v18 }
 0xcee   :  { %1443 = vtanh.f32 %v1030_v21 }
 0xcf7   :  { %v1442_v22 = vpop.eup %1441 }
 0xcf8   :  { %v1444_v23 = vpop.eup %1443 }
 0xcf9   :  { %v1369_v24 = vpack.c.bf16 %v1442_v22, %v1444_v23 }
 0xcfb   :  { %1371 = vmatpush3.bf16.xpose.msk.msra.mxu1 %vm1370_vm3, %v1369_v24 }
 0xd02   :  { %1298 = vmatmul.mubr.msk.f32.vlgmr.msra.gmra.mrb[12].mxu1 %vm160_vm1, %v1040_v43 }
 0xdd5   :  { %v1122_v26 = vpop.f32.mrb[12].mxu1 }
 0xdd6   :  { %v1123_v27 = vadd.f32 %v1122_v26, %v1045_v25  ;;  %v1299_v28 = vpop.f32.mrb[13].mxu1 }
 0xdd8   :  { %1445 = vtanh.f32 %v1123_v27 }
 0xde2   :  { %v1446_v29 = vpop.eup %1445 }
 0xde3   :  { %1128 = vst.msk [vmem:[#allocation8] sm:$0x1] %vm1127_vm4, %v1446_v29 }
 0xde4   :  { %1524 = shalt.err (!%p1521_p0)
}
 0xde5   :  { %s1525_s4 = scalar_lea.hbm %s1698_s3, 16 }
 0xde6   :  { %p1526_p1 = scmp.ne.s32.totalorder %s1698_s3, %s1525_s4  ;;  %p1529_p2 = scmp.lt.u32.totalorder %s1525_s4, %s1698_s3 }
 0xde8   :  { %p1531_p3 = pnand %p1529_p2, %p1526_p1 }
 0xdea   :  { %1534 = shalt.err (!%p1531_p3)
}
 0xdeb   :  { %1138 = dma.vmem_to_hbm [thread:$0]  %s1136_s26, 16, %s1698_s3, [#allocation4]  }
 0xdec   :  { %1539 = dma.done.wait [#allocation4], 16  }
 0xded   :  { %1540 = vsyncadd [#allocation4], 4294967280 }
 0xdee   :  { %1142 = vsyncpa [#allocation3], 1 }
 0xdef   :  { %1143 = vsyncpa [#allocation6], 1 }
 0xdf0   :  { %1144 = vsyncpa [#allocation4], 1 }

</bundles_post_ra>
